<compile_context>
chip_gen: v5e
topology: v5e:2x2
jax: 0.10.0
libtpu: 0.0.40
codegen_flags: <defaults>
</compile_context>

<pallas_src>
import jax
import jax.numpy as jnp
from jax.experimental import pallas as pl
from jax.experimental.pallas import tpu as pltpu

_LANE = 128          # vreg lane width
_SUBLANE = 8         # f32 sublane height
_MAX_TILE_ROWS = 4096  # 4096 x 128 x 4B = 2 MiB per f32 block


def _h_sigmoid_kernel(x_ref, o_ref):
    x = x_ref[...]
    dt = x.dtype
    three = jnp.asarray(3.0, dt)
    zero = jnp.asarray(0.0, dt)
    six = jnp.asarray(6.0, dt)
    inv6 = jnp.asarray(1.0 / 6.0, dt)
    # relu6(x + 3) * (1/6)  -- VPU clip + mul, EUP/XLU untouched.
    o_ref[...] = (jnp.clip(x + three, zero, six) * inv6).astype(o_ref.dtype)


def _h_sigmoid_jnp(x):
    """Plain-JAX fast path for tiny inputs (kernel launch would be all overhead)."""
    dt = x.dtype
    return (jnp.clip(x + jnp.asarray(3.0, dt),
                     jnp.asarray(0.0, dt),
                     jnp.asarray(6.0, dt)) * jnp.asarray(1.0 / 6.0, dt)).astype(dt)


def h_sigmoid(x, *, max_tile_rows=_MAX_TILE_ROWS, min_pallas_elems=1 << 16):
    """Elementwise hard-sigmoid: relu6(x + 3) / 6. Accepts any float shape/dtype."""
    orig_shape = x.shape
    orig_dtype = x.dtype
    n_elem = x.size

    if n_elem == 0:
        return x
    if n_elem < min_pallas_elems:
        return _h_sigmoid_jnp(x)

    flat = x.reshape(-1)
    rem = n_elem % _LANE
    padded = rem != 0
    if padded:
        # Rare case: pad the flat tail up to the next multiple of 128 lanes.
        flat = jnp.pad(flat, (0, _LANE - rem))
    rows = flat.size // _LANE
    x2d = flat.reshape(rows, _LANE)

    # Biggest block that fits comfortably in default scoped VMEM; a single
    # block when the whole tensor fits in one.  Ragged last block (rows not a
    # multiple of tile_rows) is handled by Pallas partial blocks.
    tile_rows = min(max_tile_rows, ((rows + _SUBLANE - 1) // _SUBLANE) * _SUBLANE)
    grid = (pl.cdiv(rows, tile_rows),)

    out2d = pl.pallas_call(
        _h_sigmoid_kernel,
        out_shape=jax.ShapeDtypeStruct((rows, _LANE), orig_dtype),
        grid_spec=pltpu.PrefetchScalarGridSpec(
            num_scalar_prefetch=0,
            grid=grid,
            in_specs=[pl.BlockSpec((tile_rows, _LANE), lambda i: (i, 0))],
            out_specs=pl.BlockSpec((tile_rows, _LANE), lambda i: (i, 0)),
        ),
        compiler_params=pltpu.CompilerParams(
            dimension_semantics=("parallel",),
        ),
    )(x2d)

    out_flat = out2d.reshape(-1)
    if padded:
        out_flat = out_flat[:n_elem]
    return out_flat.reshape(orig_shape)


if __name__ == "__main__":
    key = jax.random.PRNGKey(0)

    # NCHW input, same convention as the PyTorch module.
    x = jax.random.normal(key, (2, 4, 16, 16), dtype=jnp.float32) * 4.0
    ref = jnp.clip(x + 3.0, 0.0, 6.0) / 6.0

    # 1) Force the Pallas path (this demo tensor is below the tiny-input cutoff).
    y = jax.block_until_ready(h_sigmoid(x, min_pallas_elems=0))
    assert y.shape == x.shape and y.dtype == x.dtype
    assert jnp.max(jnp.abs(y - ref)) <= 2e-6

    # 2) Ragged / padded path: element count not a multiple of 128.
    x_odd = jax.random.normal(jax.random.PRNGKey(1), (2, 4, 15, 13), dtype=jnp.float32) * 4.0
    ref_odd = jnp.clip(x_odd + 3.0, 0.0, 6.0) / 6.0
    y_odd = jax.block_until_ready(h_sigmoid(x_odd, min_pallas_elems=0))
    assert y_odd.shape == x_odd.shape and y_odd.dtype == x_odd.dtype
    assert jnp.max(jnp.abs(y_odd - ref_odd)) <= 2e-6

    # 3) bf16 dtype preservation through the Pallas path.
    x_bf16 = (jax.random.normal(jax.random.PRNGKey(2), (2, 4, 16, 16)) * 4.0).astype(jnp.bfloat16)
    ref_bf16 = (jnp.clip(x_bf16.astype(jnp.float32) + 3.0, 0.0, 6.0) / 6.0)
    y_bf16 = jax.block_until_ready(h_sigmoid(x_bf16, min_pallas_elems=0))
    assert y_bf16.dtype == jnp.bfloat16
    assert jnp.max(jnp.abs(y_bf16.astype(jnp.float32) - ref_bf16)) <= 1e-2

    # 4) Default small-input fast path (no kernel launch).
    y_small = jax.block_until_ready(h_sigmoid(x))
    assert jnp.max(jnp.abs(y_small - ref)) <= 2e-6

    print("KERNEL_OK")
</pallas_src>

<mosaic_0001>
module attributes {stable_mosaic.version = 11 : i64} {
  func.func @_h_sigmoid_kernel(%arg0: i32, %arg1: memref<16x128xf32, #tpu.memory_space<vmem>>, %arg2: memref<16x128xf32, #tpu.memory_space<vmem>>) attributes {dimension_semantics = [#tpu.dimension_semantics<parallel>], iteration_bounds = array<i64: 1>, scalar_prefetch = 0 : i64, scratch_operands = 0 : i64, tpu.core_type = #tpu.core_type<tc>, window_params = [{transform_indices = @transform_0, window_bounds = array<i64: 16, 128>}, {transform_indices = @transform_1, window_bounds = array<i64: 16, 128>}]} {
    %c0 = arith.constant 0 : index
    %c0_0 = arith.constant 0 : index
    %0 = vector.load %arg1[%c0, %c0_0] : memref<16x128xf32, #tpu.memory_space<vmem>>, vector<16x128xf32>
    %cst = arith.constant 3.000000e+00 : f32
    %1 = vector.broadcast %cst : f32 to vector<16x128xf32>
    %2 = arith.addf %0, %1 : vector<16x128xf32>
    %cst_1 = arith.constant 0.000000e+00 : f32
    %cst_2 = arith.constant 6.000000e+00 : f32
    %3 = vector.broadcast %cst_1 : f32 to vector<16x128xf32>
    %4 = arith.maximumf %3, %2 : vector<16x128xf32>
    %5 = vector.broadcast %cst_2 : f32 to vector<16x128xf32>
    %6 = arith.minimumf %5, %4 : vector<16x128xf32>
    %cst_3 = arith.constant 0.166666672 : f32
    %7 = vector.broadcast %cst_3 : f32 to vector<16x128xf32>
    %8 = arith.mulf %6, %7 : vector<16x128xf32>
    %c0_4 = arith.constant 0 : index
    %c0_5 = arith.constant 0 : index
    %9 = vector.load %arg2[%c0_4, %c0_5] : memref<16x128xf32, #tpu.memory_space<vmem>>, vector<16x128xf32>
    tpu.vector_store %arg2[%c0_4, %c0_5], %8 {strides = array<i32>} : memref<16x128xf32, #tpu.memory_space<vmem>>, vector<16x128xf32>,
    return
  }
  func.func @transform_0(%arg0: i32) -> (i32, i32) {
    %c0_i32 = arith.constant 0 : i32
    %c0_i32_0 = arith.constant 0 : i32
    return %arg0, %c0_i32 : i32, i32
  }
  func.func @transform_1(%arg0: i32) -> (i32, i32) {
    %c0_i32 = arith.constant 0 : i32
    %c0_i32_0 = arith.constant 0 : i32
    return %arg0, %c0_i32 : i32, i32
  }
}

</mosaic_0001>

<bundles_post_ra>
// kernel: tpu_custom_call.1
= control target key start
LH: loop header
LB: loop body
LE: loop exit
PB: predicated region body
PF: predicated region fallthrough
CT: control target
= control target key end

     0   :  { %6 = vsyncpa [#allocation3], 0  ;;  %s132_s0 = inlined_call_operand.hbm [shape: f32[16,128], index: 0, kind: input, shape index: {}]   ;;  %s133_s1 = inlined_call_operand.hbm [shape: f32[16,128], index: 1, kind: output, shape index: {}]  }
   0x1   :  { %7 = vsyncpa [#allocation4], 0  ;;  %s12_s8 = sshll.u32 %s132_s0, 4  ;;  %s112_s9 = smov [#allocation2]   ;;  %s13_s8 = int_to_ptr.hbm [resolvable:$true] %s12_s8 }
   0x2   :  { %s14_s10 = sshll.u32 %s112_s9, 4  ;;  %s113_s11 = smov 128   ;;  %s15_s10 = int_to_ptr.vmem [resolvable:$true] %s14_s10 }
   0x3   :  { %s114_s12 = smov 8  }
   0x4   :  { %20 = dma.hbm_to_vmem [thread:$0]  %s13_s8, 256, %s15_s10, [#allocation3], %s113_s11, %s113_s11, %s114_s12  }
   0x5   :  { %108 = dma.done.wait [#allocation3], 256  }
   0x6   :  { %109 = vsyncadd [#allocation3], 4294967040  ;;  %v25_v0 = vld [vmem:[#allocation2] sm:$0xff]  ;;  %v26_v1 = vld [vmem:[#allocation2 + $0x8] sm:$0xff]  ;;  %s115_s13 = smov [#allocation5]   ;;  %s43_s16 = sshll.u32 %s133_s1, 4  ;;  %s44_s16 = int_to_ptr.hbm [resolvable:$true] %s43_s16 }
   0x7   :  { %v27_v2 = vadd.f32 3.0, %v25_v0  ;;  %v28_v3 = vadd.f32 3.0, %v26_v1  ;;  %s41_s14 = sshll.u32 %s115_s13, 4  ;;  %s42_s14 = int_to_ptr.vmem [resolvable:$true] %s41_s14 }
   0x9   :  { %v29_v4 = vmax.f32 %v27_v2, 0.0  ;;  %v30_v5 = vmax.f32 %v28_v3, 0.0 }
   0xb   :  { %v31_v6 = vmin.f32 %v29_v4, 6.0  ;;  %v32_v7 = vmin.f32 %v30_v5, 6.0 }
   0xd   :  { %v33_v8 = vmul.f32 0.16666667, %v31_v6  ;;  %v34_v9 = vmul.f32 0.16666667, %v32_v7 }
   0xf   :  { %35 = vst [vmem:[#allocation5] sm:$0xff] %v33_v8 }
  0x10   :  { %36 = vst [vmem:[#allocation5 + $0x8] sm:$0xff] %v34_v9 }
  0x11   :  { %49 = dma.vmem_to_hbm [thread:$0]  %s42_s14, 256, %s44_s16, [#allocation4], %s113_s11, %s113_s11, %s114_s12  }
  0x12   :  { %110 = dma.done.wait [#allocation4], 256  }
  0x13   :  { %111 = vsyncadd [#allocation4], 4294967040 }
  0x14   :  { %54 = vsyncpa [#allocation3], 1 }
  0x15   :  { %55 = vsyncpa [#allocation4], 1 }

</bundles_post_ra>
